<compile_context>
chip_gen: v7x
topology: tpu7x:2x2x1
jax: 0.10.0
libtpu: 0.0.40
codegen_flags: <defaults>
</compile_context>

<pallas_src>
import functools

import jax
import jax.numpy as jnp
from jax import lax
from jax.experimental import pallas as pl
from jax.experimental.pallas import tpu as pltpu


def _round_up(v, m):
    return ((v + m - 1) // m) * m


def _largest_divisor_tile(dim, cap, unit=128):
    """Largest multiple of `unit` that divides `dim` and is <= cap (or None)."""
    best = None
    t = unit
    lim = min(cap, dim)
    while t <= lim:
        if dim % t == 0:
            best = t
        t += unit
    return best


def _norm_linear_kernel(x_ref, w_ref, scale_ref, b_ref, o_ref, acc_ref):
    # Blocks: x (tm, tk), w (tn, tk), scale (1, tn) f32, bias (1, tn) f32,
    #         o (tm, tn).  Scratch: acc (tm, tn) f32 matmul accumulator.
    k = pl.program_id(2)
    nk = pl.num_programs(2)

    @pl.when(k == 0)
    def _init():
        acc_ref[...] = jnp.zeros_like(acc_ref)

    # y_tile += x @ W_tile^T: contract K on both operands; Mosaic drives the
    # MXU with the (tn, tk) layout directly (no explicit .T / XLU transpose),
    # native-dtype operands, f32 accumulation.
    acc_ref[...] += lax.dot_general(
        x_ref[...], w_ref[...],
        dimension_numbers=(((1,), (1,)), ((), ())),
        preferred_element_type=jnp.float32)

    @pl.when(k == nk - 1)
    def _finalize():
        # Fold the row-normalization in as a per-output-column scale; scale
        # and bias are already f32 and lane-aligned with the accumulator.
        o_ref[...] = (acc_ref[...] * scale_ref[...] + b_ref[...]).astype(o_ref.dtype)


def norm_linear(x, weight, bias=None, norm_value=1.0, *,
                tm=None, tn=None, tk=None, weight_buffers=2):
    """y = x @ (row_l2_normalize(weight) * norm_value)^T + bias."""
    B, K = x.shape
    N, K2 = weight.shape
    assert K == K2, "in_features mismatch"

    itemsize = jnp.dtype(x.dtype).itemsize
    # Sublane packing width: 8 for f32, 16 for bf16, 32 for int8/fp8.
    sublane = 8 * max(1, 4 // itemsize)

    # --- Hoisted row-norm: one f32 pass over W in the wrapper (never repeated
    #     per batch tile inside the kernel). ---
    w_f32 = weight.astype(jnp.float32)
    norms = jnp.sqrt(jnp.sum(w_f32 * w_f32, axis=1))               # (N,)
    scale = (jnp.float32(norm_value) / (norms + 1e-6)).reshape(1, N)

    # --- Tile selection: prefer tiles that divide the true dims so the big
    #     jnp.pad of W (an extra full HBM rewrite) is avoided. ---
    N_pad = _round_up(N, 128)
    K_pad = _round_up(K, 128)
    if tm is None:
        tm = min(256, _round_up(B, sublane))       # 256 matches the v6e/v7x MXU M dim
    if tn is None:
        tn = _largest_divisor_tile(N_pad, 512)
    if tk is None:
        tk = _largest_divisor_tile(K_pad, 2048)
    B_pad = _round_up(B, tm)
    N_pad = _round_up(N_pad, tn)
    K_pad = _round_up(K_pad, tk)

    # Megacore (v7x, 2 TCs): keep the parallel extent >= 2 blocks when we can.
    # Costs little on single-TC v5e/v6e, ~2x on v7x when B fits one tile.
    if (B_pad // tm) * (N_pad // tn) < 2:
        tn_small = _largest_divisor_tile(N_pad, N_pad // 2)
        if tn_small is not None:
            tn = tn_small

    # VMEM budget guard (conservative for v7x's 64 MiB physical VMEM); the
    # default tiles above land around ~14 MiB so this only triggers for
    # oversized explicit tiles.
    def _vmem_bytes(tm_, tn_, tk_):
        b = 2 * (tm_ * tk_ + tn_ * tk_) * itemsize   # x / W double-buffered
        b += 2 * tm_ * tn_ * itemsize                # output double buffer
        b += tm_ * tn_ * 4                           # f32 accumulator scratch
        b += 4 * tn_ * 4 * 2                         # scale + bias blocks
        return b

    VMEM_BUDGET = 24 * 1024 * 1024
    while tk > 128 and _vmem_bytes(tm, tn, tk) > VMEM_BUDGET:
        tk = _largest_divisor_tile(K_pad, tk - 128) or 128

    # --- Padding (zero padding is exact: padded K contributes 0 to the matmul;
    #     padded N columns get scale 0 so their outputs are exactly 0 and are
    #     sliced off).  Only materialize a pad when actually needed. ---
    x_p = x if (B_pad == B and K_pad == K) else jnp.pad(
        x, ((0, B_pad - B), (0, K_pad - K)))
    w_p = weight if (N_pad == N and K_pad == K) else jnp.pad(
        weight, ((0, N_pad - N), (0, K_pad - K)))
    scale_p = scale if N_pad == N else jnp.pad(scale, ((0, 0), (0, N_pad - N)))
    if bias is None:
        b_p = jnp.zeros((1, N_pad), dtype=jnp.float32)
    else:
        b_p = bias.astype(jnp.float32).reshape(1, N)
        if N_pad != N:
            b_p = jnp.pad(b_p, ((0, 0), (0, N_pad - N)))

    grid = (B_pad // tm, N_pad // tn, K_pad // tk)

    # Optional extra weight buffering for the weight-streaming-bound regime
    # (small B, exposed DMA).  Default 2 = standard double buffering.
    w_spec_kwargs = {}
    if weight_buffers and weight_buffers > 2:
        w_spec_kwargs["pipeline_mode"] = pl.Buffered(weight_buffers)
    w_spec = pl.BlockSpec((tn, tk), lambda i, j, k: (j, k), **w_spec_kwargs)

    out = pl.pallas_call(
        _norm_linear_kernel,
        out_shape=jax.ShapeDtypeStruct((B_pad, N_pad), x.dtype),
        grid_spec=pltpu.PrefetchScalarGridSpec(
            num_scalar_prefetch=0,
            grid=grid,
            in_specs=[
                pl.BlockSpec((tm, tk), lambda i, j, k: (i, k)),   # x
                w_spec,                                           # weight
                pl.BlockSpec((1, tn), lambda i, j, k: (0, j)),    # scale (f32)
                pl.BlockSpec((1, tn), lambda i, j, k: (0, j)),    # bias  (f32)
            ],
            out_specs=pl.BlockSpec((tm, tn), lambda i, j, k: (i, j)),
            scratch_shapes=[
                pltpu.VMEM((tm, tn), jnp.float32),  # matmul accumulator
            ],
        ),
        compiler_params=pltpu.CompilerParams(
            # B and N axes are independent (megacore-shardable); K is the
            # reduction axis and stays "arbitrary" (and last in the grid).
            dimension_semantics=("parallel", "parallel", "arbitrary"),
            # Raise v5e's 16 MiB default scoped limit; matches v6e/v7x default
            # and stays well inside v7x's 64 MiB physical VMEM.
            vmem_limit_bytes=32 * 1024 * 1024,
        ),
    )(x_p, w_p, scale_p, b_p)

    return out[:B, :N]


def norm_linear_reference(x, weight, bias, norm_value=1.0):
    norms = jnp.linalg.norm(weight, axis=1, keepdims=True)
    w_n = weight * (norm_value / (norms + 1e-6))
    y = x @ w_n.T
    if bias is not None:
        y = y + bias[None, :]
    return y


if __name__ == "__main__":
    key = jax.random.PRNGKey(0)
    k_w, k_x, k_w2, k_x2, k_b2, k_w3, k_x3, k_b3 = jax.random.split(key, 8)

    # --- Test 1: module-sized toy shapes (single-tile grid) ---
    batch, in_features, out_features = 8, 32, 64
    norm_value = 1.0
    weight = jax.random.normal(k_w, (out_features, in_features), dtype=jnp.float32)
    bias = jnp.zeros((out_features,), dtype=jnp.float32)
    x = jax.random.normal(k_x, (batch, in_features), dtype=jnp.float32)

    out = jax.block_until_ready(norm_linear(x, weight, bias, norm_value))
    ref = norm_linear_reference(x, weight, bias, norm_value)
    assert out.shape == (batch, out_features)
    assert jnp.allclose(out, ref, atol=2e-4, rtol=2e-4), "mismatch vs reference (test 1)"

    # --- Test 2: multi-tile grid with explicit small tiles (K accumulation) ---
    B2, K2, N2 = 16, 384, 256
    w2 = jax.random.normal(k_w2, (N2, K2), dtype=jnp.float32)
    x2 = jax.random.normal(k_x2, (B2, K2), dtype=jnp.float32)
    b2 = jax.random.normal(k_b2, (N2,), dtype=jnp.float32)

    out2 = jax.block_until_ready(norm_linear(x2, w2, b2, 1.5, tm=8, tn=128, tk=128))
    ref2 = norm_linear_reference(x2, w2, b2, 1.5)
    assert out2.shape == (B2, N2)
    assert jnp.allclose(out2, ref2, atol=2e-4, rtol=2e-4), "mismatch vs reference (test 2)"

    # --- Test 3: default tile selection + ragged (padded) shapes ---
    B3, K3, N3 = 10, 200, 72
    w3 = jax.random.normal(k_w3, (N3, K3), dtype=jnp.float32)
    x3 = jax.random.normal(k_x3, (B3, K3), dtype=jnp.float32)
    b3 = jax.random.normal(k_b3, (N3,), dtype=jnp.float32)

    out3 = jax.block_until_ready(norm_linear(x3, w3, b3, 0.5))
    ref3 = norm_linear_reference(x3, w3, b3, 0.5)
    assert out3.shape == (B3, N3)
    assert jnp.allclose(out3, ref3, atol=2e-4, rtol=2e-4), "mismatch vs reference (test 3)"

    print("KERNEL_OK")
</pallas_src>

<mosaic_0001>
module attributes {stable_mosaic.version = 11 : i64} {
  func.func @_norm_linear_kernel(%arg0: i32, %arg1: i32, %arg2: i32, %arg3: memref<8x128xf32, #tpu.memory_space<vmem>>, %arg4: memref<128x128xf32, #tpu.memory_space<vmem>>, %arg5: memref<1x128xf32, #tpu.memory_space<vmem>>, %arg6: memref<1x128xf32, #tpu.memory_space<vmem>>, %arg7: memref<8x128xf32, #tpu.memory_space<vmem>>, %arg8: memref<8x128xf32, #tpu.memory_space<vmem>>) attributes {dimension_semantics = [#tpu.dimension_semantics<parallel>, #tpu.dimension_semantics<parallel>, #tpu.dimension_semantics<arbitrary>], iteration_bounds = array<i64: 1, 1, 1>, scalar_prefetch = 0 : i64, scratch_operands = 1 : i64, tpu.core_type = #tpu.core_type<tc>, window_params = [{transform_indices = @transform_0, window_bounds = array<i64: 8, 128>}, {transform_indices = @transform_1, window_bounds = array<i64: 128, 128>}, {transform_indices = @transform_2, window_bounds = array<i64: 1, 128>}, {transform_indices = @transform_3, window_bounds = array<i64: 1, 128>}, {transform_indices = @transform_4, window_bounds = array<i64: 8, 128>}]} {
    %c0_i32 = arith.constant 0 : i32
    %0 = arith.cmpi eq, %arg2, %c0_i32 : i32
    %1 = arith.extui %0 : i1 to i32
    %c0_i32_0 = arith.constant 0 : i32
    %2 = arith.cmpi ne, %1, %c0_i32_0 : i32
    scf.if %2 {
      %cst_10 = arith.constant 0.000000e+00 : f32
      %12 = vector.broadcast %cst_10 : f32 to vector<8x128xf32>
      %c0_11 = arith.constant 0 : index
      %c0_12 = arith.constant 0 : index
      %13 = vector.load %arg8[%c0_11, %c0_12] : memref<8x128xf32, #tpu.memory_space<vmem>>, vector<8x128xf32>
      tpu.vector_store %arg8[%c0_11, %c0_12], %12 {strides = array<i32>} : memref<8x128xf32, #tpu.memory_space<vmem>>, vector<8x128xf32>,
    } else {
    }
    %c0 = arith.constant 0 : index
    %c0_1 = arith.constant 0 : index
    %3 = vector.load %arg8[%c0, %c0_1] : memref<8x128xf32, #tpu.memory_space<vmem>>, vector<8x128xf32>
    %c0_2 = arith.constant 0 : index
    %c0_3 = arith.constant 0 : index
    %4 = vector.load %arg3[%c0_2, %c0_3] : memref<8x128xf32, #tpu.memory_space<vmem>>, vector<8x128xf32>
    %c0_4 = arith.constant 0 : index
    %c0_5 = arith.constant 0 : index
    %5 = vector.load %arg4[%c0_4, %c0_5] : memref<128x128xf32, #tpu.memory_space<vmem>>, vector<128x128xf32>
    %cst = arith.constant dense<0.000000e+00> : vector<8x128xf32>
    %6 = tpu.matmul %4, %5, %cst {dimension_numbers = #tpu.dot_dimension_numbers<[1], [1], [0], [0], [0, 0, 1, 0], [], []>} : vector<8x128xf32>, vector<128x128xf32>, vector<8x128xf32> -> vector<8x128xf32>
    %7 = arith.addf %3, %6 : vector<8x128xf32>
    %c0_6 = arith.constant 0 : index
    %c0_7 = arith.constant 0 : index
    %8 = vector.load %arg8[%c0_6, %c0_7] : memref<8x128xf32, #tpu.memory_space<vmem>>, vector<8x128xf32>
    tpu.vector_store %arg8[%c0_6, %c0_7], %7 {strides = array<i32>} : memref<8x128xf32, #tpu.memory_space<vmem>>, vector<8x128xf32>,
    %c0_i32_8 = arith.constant 0 : i32
    %9 = arith.cmpi eq, %arg2, %c0_i32_8 : i32
    %10 = arith.extui %9 : i1 to i32
    %c0_i32_9 = arith.constant 0 : i32
    %11 = arith.cmpi ne, %10, %c0_i32_9 : i32
    scf.if %11 {
      %c0_10 = arith.constant 0 : index
      %c0_11 = arith.constant 0 : index
      %12 = vector.load %arg8[%c0_10, %c0_11] : memref<8x128xf32, #tpu.memory_space<vmem>>, vector<8x128xf32>
      %c0_12 = arith.constant 0 : index
      %c0_13 = arith.constant 0 : index
      %13 = vector.load %arg5[%c0_12, %c0_13] : memref<1x128xf32, #tpu.memory_space<vmem>>, vector<1x128xf32>
      %14 = vector.broadcast %13 : vector<1x128xf32> to vector<8x128xf32>
      %15 = arith.mulf %12, %14 : vector<8x128xf32>
      %c0_14 = arith.constant 0 : index
      %c0_15 = arith.constant 0 : index
      %16 = vector.load %arg6[%c0_14, %c0_15] : memref<1x128xf32, #tpu.memory_space<vmem>>, vector<1x128xf32>
      %17 = vector.broadcast %16 : vector<1x128xf32> to vector<8x128xf32>
      %18 = arith.addf %15, %17 : vector<8x128xf32>
      %c0_16 = arith.constant 0 : index
      %c0_17 = arith.constant 0 : index
      %19 = vector.load %arg7[%c0_16, %c0_17] : memref<8x128xf32, #tpu.memory_space<vmem>>, vector<8x128xf32>
      tpu.vector_store %arg7[%c0_16, %c0_17], %18 {strides = array<i32>} : memref<8x128xf32, #tpu.memory_space<vmem>>, vector<8x128xf32>,
    } else {
    }
    return
  }
  func.func @transform_0(%arg0: i32, %arg1: i32, %arg2: i32) -> (i32, i32) {
    %c0_i32 = arith.constant 0 : i32
    return %arg0, %arg2 : i32, i32
  }
  func.func @transform_1(%arg0: i32, %arg1: i32, %arg2: i32) -> (i32, i32) {
    %c0_i32 = arith.constant 0 : i32
    return %arg1, %arg2 : i32, i32
  }
  func.func @transform_2(%arg0: i32, %arg1: i32, %arg2: i32) -> (i32, i32) {
    %c0_i32 = arith.constant 0 : i32
    %c0_i32_0 = arith.constant 0 : i32
    return %c0_i32, %arg1 : i32, i32
  }
  func.func @transform_3(%arg0: i32, %arg1: i32, %arg2: i32) -> (i32, i32) {
    %c0_i32 = arith.constant 0 : i32
    %c0_i32_0 = arith.constant 0 : i32
    return %c0_i32, %arg1 : i32, i32
  }
  func.func @transform_4(%arg0: i32, %arg1: i32, %arg2: i32) -> (i32, i32) {
    %c0_i32 = arith.constant 0 : i32
    return %arg0, %arg1 : i32, i32
  }
}

</mosaic_0001>

<bundles_post_ra>
// kernel: tpu_custom_call.1
= control target key start
LH: loop header
LB: loop body
LE: loop exit
PB: predicated region body
PF: predicated region fallthrough
CT: control target
= control target key end

     0   :  { %9 = vsyncpa [#allocation4], 0  ;;  %s416_s0 = inlined_call_operand.hbm [shape: f32[8,128], index: 0, kind: input, shape index: {}]   ;;  %s417_s1 = inlined_call_operand.hbm [shape: f32[128,128], index: 1, kind: input, shape index: {}]   ;;  %s418_s2 = inlined_call_operand.vmem [shape: f32[1,128], index: 2, kind: input, shape index: {}]   ;;  %s419_s3 = inlined_call_operand.vmem [shape: f32[1,128], index: 3, kind: input, shape index: {}]   ;;  %s420_s4 = inlined_call_operand.hbm [shape: f32[8,128], index: 4, kind: output, shape index: {}]  }
   0x1   :  { %10 = vsyncpa [#allocation7], 0 }
   0x2   :  { %11 = vsyncpa [#allocation5], 0  ;;  %s334_s15 = smov [#allocation3]   ;;  %s335_s17 = smov [#allocation6]  }
   0x3   :  { %s18_s16 = sshll.u32 %s334_s15, 4  ;;  %s27_s18 = sshll.u32 %s335_s17, 4  ;;  %s19_s16 = int_to_ptr.vmem [resolvable:$true] %s18_s16  ;;  %s367_s18 = int_to_ptr.vmem [resolvable:$true] %s27_s18 }
   0x4   :  { %s262_s21 = scalar_lea.hbm %s416_s0, 128 }
   0x5   :  { %p263_p0 = scmp.ne.s32.totalorder %s416_s0, %s262_s21  ;;  %p266_p1 = scmp.lt.u32.totalorder %s262_s21, %s416_s0 }
   0x7   :  { %p268_p2 = pnand %p266_p1, %p263_p0 }
   0x9   :  { %271 = shalt.err (!%p268_p2)
}
   0xa   :  { %s272_s26 = scalar_lea.vmem %s19_s16, 128  ;;  %p277_p4 = scmp.lt.s32.totalorder %s19_s16, %s19_s16 }
   0xb   :  { %p273_p3 = scmp.ne.s32.totalorder %s19_s16, %s272_s26  ;;  %p278_p5 = scmp.lt.s32.totalorder %s272_s26, %s272_s26 }
   0xd   :  { %p279_p6 = por %p278_p5, %p277_p4 }
   0xf   :  { %p280_p7 = pnand %p279_p6, %p273_p3 }
  0x11   :  { %283 = shalt.err (!%p280_p7)
}
  0x12   :  { %21 = dma.hbm_to_vmem [thread:$0]  %s416_s0, 128, %s19_s16, [#allocation4]  }
  0x13   :  { %s284_s5 = scalar_lea.hbm %s417_s1, 2048 }
  0x14   :  { %p285_p8 = scmp.ne.s32.totalorder %s417_s1, %s284_s5  ;;  %p288_p9 = scmp.lt.u32.totalorder %s284_s5, %s417_s1 }
  0x16   :  { %p290_p10 = pnand %p288_p9, %p285_p8 }
  0x18   :  { %293 = shalt.err (!%p290_p10)
}
  0x19   :  { %s294_s10 = scalar_lea.vmem %s367_s18, 2048  ;;  %p299_p12 = scmp.lt.s32.totalorder %s367_s18, %s367_s18 }
  0x1a   :  { %p295_p11 = scmp.ne.s32.totalorder %s367_s18, %s294_s10  ;;  %p300_p13 = scmp.lt.s32.totalorder %s294_s10, %s294_s10 }
  0x1c   :  { %p301_p0 = por %p300_p13, %p299_p12 }
  0x1e   :  { %p302_p1 = pnand %p301_p0, %p295_p11 }
  0x20   :  { %305 = shalt.err (!%p302_p1)
}
  0x21   :  { %s336_s0 = smov 128   ;;  %s337_s11 = smov 8  }
  0x22   :  { %33 = dma.hbm_to_vmem [thread:$0]  %s417_s1, 2048, %s367_s18, [#allocation7], %s336_s0, %s336_s0, %s337_s11  }
  0x23   :  { %328 = dma.done.wait [#allocation4], 128  }
  0x24   :  { %329 = vsyncadd [#allocation4], 4294967168 }
  0x25   :  { %330 = dma.done.wait [#allocation7], 2048  }
  0x26   :  { %331 = vsyncadd [#allocation7], 4294965248  ;;  %v338_v0 = vmov 0.0|0.0   ;;  %vm339_vm0 = vmmov 0   ;;  %v340_v1 = vmov 0.0   ;;  %v51_v2 = vld [vmem:[#allocation6] sm:$0xff] }
  0x27   :  { %230 = vmatprep.subr.bf16.mxu0 %v338_v0  ;;  %227 = vmatprep.mubr.msk.f32.mxu0 %vm339_vm0, %v340_v1  ;;  %v52_v3 = vld [vmem:[#allocation6 + $0x8] sm:$0xff]  ;;  %v53_v5 = vld [vmem:[#allocation6 + $0x10] sm:$0xff]  ;;  %v54_v6 = vld [vmem:[#allocation6 + $0x18] sm:$0xff]  ;;  %s341_s17 = smov [#allocation8]  }
  0x28   :  { %v231_v4 = vpack.c.bf16 %v52_v3, %v51_v2  ;;  %v234_v7 = vpack.c.bf16 %v54_v6, %v53_v5  ;;  %v55_v8 = vld [vmem:[#allocation6 + $0x20] sm:$0xff]  ;;  %v56_v9 = vld [vmem:[#allocation6 + $0x28] sm:$0xff]  ;;  %v57_v11 = vld [vmem:[#allocation6 + $0x30] sm:$0xff]  ;;  %s166_s18 = sshll.u32 %s341_s17, 4  ;;  %s167_s18 = int_to_ptr.vmem [resolvable:$true] %s166_s18 }
  0x29   :  { %v237_v10 = vpack.c.bf16 %v56_v9, %v55_v8  ;;  %v58_v12 = vld [vmem:[#allocation6 + $0x38] sm:$0xff]  ;;  %v59_v14 = vld [vmem:[#allocation6 + $0x40] sm:$0xff]  ;;  %v60_v15 = vld [vmem:[#allocation6 + $0x48] sm:$0xff]  ;;  %s306_s19 = scalar_lea.vmem %s167_s18, 128  ;;  %p311_p3 = scmp.lt.s32.totalorder %s167_s18, %s167_s18 }
  0x2a   :  { %232 = vmatpush3.bf16.xpose.msra.mxu0 %v231_v4  ;;  %v240_v13 = vpack.c.bf16 %v58_v12, %v57_v11  ;;  %v243_v16 = vpack.c.bf16 %v60_v15, %v59_v14  ;;  %v61_v17 = vld [vmem:[#allocation6 + $0x50] sm:$0xff]  ;;  %v62_v18 = vld [vmem:[#allocation6 + $0x58] sm:$0xff]  ;;  %v63_v20 = vld [vmem:[#allocation6 + $0x60] sm:$0xff]  ;;  %p307_p2 = scmp.ne.s32.totalorder %s167_s18, %s306_s19  ;;  %p312_p4 = scmp.lt.s32.totalorder %s306_s19, %s306_s19 }
  0x2b   :  { %233 = vmatprep.subr.bf16.mxu0 %v338_v0  ;;  %v246_v19 = vpack.c.bf16 %v62_v18, %v61_v17  ;;  %v64_v21 = vld [vmem:[#allocation6 + $0x68] sm:$0xff]  ;;  %v65_v23 = vld [vmem:[#allocation6 + $0x70] sm:$0xff]  ;;  %v66_v24 = vld [vmem:[#allocation6 + $0x78] sm:$0xff] }
  0x2c   :  { %v249_v22 = vpack.c.bf16 %v64_v21, %v63_v20  ;;  %v252_v25 = vpack.c.bf16 %v66_v24, %v65_v23  ;;  %v50_v26 = vld [vmem:[#allocation3] sm:$0xff]  ;;  %p313_p5 = por %p312_p4, %p311_p3 }
  0x2d   :  { %v176_v27 = vld [vmem:[%s418_s2] ss:$0 sm:$0xff] }
  0x2e   :  { %v177_v29 = vld [vmem:[%s419_s3] ss:$0 sm:$0xff]  ;;  %p314_p6 = pnand %p313_p5, %p307_p2 }
  0x32   :  { %235 = vmatpush3.bf16.xpose.msra.mxu0 %v234_v7 }
  0x33   :  { %236 = vmatprep.subr.bf16.mxu0 %v338_v0 }
  0x3a   :  { %238 = vmatpush3.bf16.xpose.msra.mxu0 %v237_v10 }
  0x3b   :  { %239 = vmatprep.subr.bf16.mxu0 %v338_v0 }
  0x42   :  { %241 = vmatpush3.bf16.xpose.msra.mxu0 %v240_v13 }
  0x43   :  { %242 = vmatprep.subr.bf16.mxu0 %v338_v0 }
  0x4a   :  { %244 = vmatpush3.bf16.xpose.msra.mxu0 %v243_v16 }
  0x4b   :  { %245 = vmatprep.subr.bf16.mxu0 %v338_v0 }
  0x52   :  { %247 = vmatpush3.bf16.xpose.msra.mxu0 %v246_v19 }
  0x53   :  { %248 = vmatprep.subr.bf16.mxu0 %v338_v0 }
  0x5a   :  { %250 = vmatpush3.bf16.xpose.msra.mxu0 %v249_v22 }
  0x5b   :  { %251 = vmatprep.subr.bf16.mxu0 %v338_v0 }
  0x62   :  { %253 = vmatpush3.bf16.xpose.msra.mxu0 %v252_v25 }
  0x69   :  { %228 = vmatmul.mubr.f32.vlgmr.msra.gmra.mrb[0].mxu0 %v50_v26 }
 0x13c   :  { %v133_v28 = vpop.f32.mrb[0].mxu0 }
 0x13d   :  { %v150_v30 = vmul.f32 %v176_v27, %v133_v28  ;;  %v229_v31 = vpop.f32.mrb[1].mxu0 }
 0x13f   :  { %v158_v32 = vadd.f32 %v177_v29, %v150_v30 }
 0x141   :  { %159 = vst [vmem:[#allocation8] sm:$0xff] %v158_v32 }
 0x142   :  { %317 = shalt.err (!%p314_p6)
}
 0x143   :  { %s318_s21 = scalar_lea.hbm %s420_s4, 128 }
 0x144   :  { %p319_p7 = scmp.ne.s32.totalorder %s420_s4, %s318_s21  ;;  %p322_p8 = scmp.lt.u32.totalorder %s318_s21, %s420_s4 }
 0x146   :  { %p324_p9 = pnand %p322_p8, %p319_p7 }
 0x148   :  { %327 = shalt.err (!%p324_p9)
}
 0x149   :  { %169 = dma.vmem_to_hbm [thread:$0]  %s167_s18, 128, %s420_s4, [#allocation5]  }
 0x14a   :  { %332 = dma.done.wait [#allocation5], 128  }
 0x14b   :  { %333 = vsyncadd [#allocation5], 4294967168 }
 0x14c   :  { %173 = vsyncpa [#allocation4], 1 }
 0x14d   :  { %174 = vsyncpa [#allocation7], 1 }
 0x14e   :  { %175 = vsyncpa [#allocation5], 1 }

</bundles_post_ra>
